<compile_context>
chip_gen: v5e
topology: v5e:2x2
jax: 0.10.0
libtpu: 0.0.40
codegen_flags: <defaults>
</compile_context>

<pallas_src>
import jax
import jax.numpy as jnp
import numpy as np
from jax.experimental import pallas as pl
from jax.experimental.pallas import tpu as pltpu

LANE = 128            # TPU vreg lane width
DEFAULT_TILE_N = 512  # vocab tile width for the output projection (raise for large vocab)


def _round_up(x, m):
    return (x + m - 1) // m * m


def decoder_kernel(tok_ref,        # SMEM (T,) int32 token ids (scalar prefetch; drive emb gather)
                   emb_row_ref,    # VMEM (1, 1, Ep) bf16   only step t's embedding row is DMA'd
                   h_ref,          # VMEM (1, Hp)    f32    initial hidden state (lane padded)
                   w_gru_ref,      # VMEM (Ep+Hp, 4Hp) bf16 fused 4-slab GRU weight (resident)
                   b_gru_ref,      # VMEM (1, 4Hp)   f32    fused GRU bias
                   w_lin_ref,      # VMEM (Hp, TN)   bf16   current vocab tile of output proj
                   b_lin_ref,      # VMEM (1, TN)    f32
                   result_ref,     # VMEM (1, 1, TN) f32    logits tile for step t (lane dense)
                   hidden_ref,     # VMEM (1, Hp)    f32    final hidden state (resident output)
                   h_scratch):     # VMEM (1, Hp)    f32    hidden carried across steps & tiles
    del tok_ref  # consumed by the embedding BlockSpec index_map (row gather)
    t = pl.program_id(0)           # decode step
    j = pl.program_id(1)           # vocab tile
    hp = h_ref.shape[-1]
    ep = emb_row_ref.shape[-1]

    # ---- Seed the hidden-state carry from the caller's hidden on the very first iteration ----
    @pl.when(jnp.logical_and(t == 0, j == 0))
    def _():
        h_scratch[...] = h_ref[...]

    # ---- GRU cell: run once per step (first vocab tile); h stays resident in VMEM scratch ----
    @pl.when(j == 0)
    def _():
        h_prev = h_scratch[...]                                          # (1, Hp) f32
        x = jnp.maximum(emb_row_ref[...].reshape(1, ep), 0.0)            # relu(embedded), bf16
        xh = jnp.concatenate([x, h_prev.astype(w_gru_ref.dtype)], axis=1)  # (1, Ep+Hp) bf16
        # Single fused GEMV. 4 column slabs (one full 128-lane slab per slab, no cross-lane work):
        #   [ gi_r+gh_r | gi_z+gh_z | gi_n | gh_n ]
        g = jnp.dot(xh, w_gru_ref[...], preferred_element_type=jnp.float32) + b_gru_ref[...]
        r = jax.nn.sigmoid(g[:, 0 * hp:1 * hp])
        z = jax.nn.sigmoid(g[:, 1 * hp:2 * hp])
        n = jnp.tanh(g[:, 2 * hp:3 * hp] + r * g[:, 3 * hp:4 * hp])
        h_new = (1.0 - z) * n + z * h_prev
        h_scratch[...] = h_new
        hidden_ref[...] = h_new        # resident output; last step's write survives

    # ---- Output projection for step t, tiled over the padded vocab (lane-dense stores) ----
    h_new = h_scratch[...]
    logits = (jnp.dot(h_new.astype(w_lin_ref.dtype), w_lin_ref[...],
                      preferred_element_type=jnp.float32) + b_lin_ref[...])
    result_ref[...] = logits.reshape(result_ref.shape)


def make_params(key, hidden_size, embedding_size, output_size):
    """Deterministic synthetic parameters, shapes as nn.Embedding / nn.GRU / nn.Linear
    (GRU / Linear weights pre-transposed to [in_features, out_features], gate order r, z, n)."""
    ks = jax.random.split(key, 7)
    s = 1.0 / np.sqrt(hidden_size)
    emb = jax.random.normal(ks[0], (output_size, embedding_size), jnp.float32)
    w_ih = jax.random.uniform(ks[1], (embedding_size, 3 * hidden_size), jnp.float32, -s, s)
    w_hh = jax.random.uniform(ks[2], (hidden_size, 3 * hidden_size), jnp.float32, -s, s)
    b_ih = jax.random.uniform(ks[3], (1, 3 * hidden_size), jnp.float32, -s, s)
    b_hh = jax.random.uniform(ks[4], (1, 3 * hidden_size), jnp.float32, -s, s)
    w_lin = jax.random.uniform(ks[5], (hidden_size, output_size), jnp.float32, -s, s)
    b_lin = jax.random.uniform(ks[6], (1, output_size), jnp.float32, -s, s)
    return emb, w_ih, w_hh, b_ih, b_hh, w_lin, b_lin


def pack_params(params, weight_dtype=jnp.bfloat16):
    """Re-layout params into padded, lane-dense kernel layout (done once, reused every call).
    Weights go to bf16 (halves DMA bytes); biases stay f32 (tiny, added after the f32 MXU out)."""
    emb, w_ih, w_hh, b_ih, b_hh, w_lin, b_lin = params
    V, E = emb.shape
    H = w_hh.shape[0]
    Ep = _round_up(E, LANE)
    Hp = _round_up(H, LANE)
    Vp0 = _round_up(V, LANE)
    TN = min(DEFAULT_TILE_N, Vp0)
    Vp = _round_up(Vp0, TN)

    # Embedding table kept as (V, 1, Ep) so the gathered block's last two dims are full dims.
    emb_p = jnp.zeros((V, 1, Ep), weight_dtype).at[:, 0, :E].set(emb.astype(weight_dtype))

    # 4-slab fused GRU weight, rows = [x | h], columns = four 128-lane-aligned gate slabs:
    #   slab 0: r  -> W_ih_r stacked on W_hh_r  (GEMV yields gi_r + gh_r directly)
    #   slab 1: z  -> W_ih_z stacked on W_hh_z
    #   slab 2: gi_n -> W_ih_n only (hidden rows zero)
    #   slab 3: gh_n -> W_hh_n only (input rows zero)   [kept separate for the r * gh_n term]
    w_gru = jnp.zeros((Ep + Hp, 4 * Hp), jnp.float32)
    b_gru = jnp.zeros((1, 4 * Hp), jnp.float32)
    for g in range(2):  # r, z: input + hidden weights share one column slab
        w_gru = w_gru.at[:E, g * Hp:g * Hp + H].set(w_ih[:, g * H:(g + 1) * H])
        w_gru = w_gru.at[Ep:Ep + H, g * Hp:g * Hp + H].set(w_hh[:, g * H:(g + 1) * H])
        b_gru = b_gru.at[:, g * Hp:g * Hp + H].set(
            b_ih[:, g * H:(g + 1) * H] + b_hh[:, g * H:(g + 1) * H])
    w_gru = w_gru.at[:E, 2 * Hp:2 * Hp + H].set(w_ih[:, 2 * H:3 * H])          # gi_n
    b_gru = b_gru.at[:, 2 * Hp:2 * Hp + H].set(b_ih[:, 2 * H:3 * H])
    w_gru = w_gru.at[Ep:Ep + H, 3 * Hp:3 * Hp + H].set(w_hh[:, 2 * H:3 * H])   # gh_n
    b_gru = b_gru.at[:, 3 * Hp:3 * Hp + H].set(b_hh[:, 2 * H:3 * H])
    w_gru = w_gru.astype(weight_dtype)

    w_lin_p = jnp.zeros((Hp, Vp), weight_dtype).at[:H, :V].set(w_lin.astype(weight_dtype))
    b_lin_p = jnp.zeros((1, Vp), jnp.float32).at[:, :V].set(b_lin)

    dims = (E, H, V, Ep, Hp, Vp, TN)
    return (emb_p, w_gru, b_gru, w_lin_p, b_lin_p), dims


def decoder_decode(tokens, hidden, packed, dims):
    """Fused T-step (teacher-forced) decode in ONE pallas_call: weights DMA'd once, hidden carried
    in VMEM scratch across steps; only the per-step embedding row changes.
    tokens: (T,) int32; hidden: (1, 1, H) f32.  Returns (logits (T, V) f32, hidden (1, 1, H))."""
    emb_p, w_gru, b_gru, w_lin_p, b_lin_p = packed
    E, H, V, Ep, Hp, Vp, TN = dims
    num_tiles = Vp // TN
    toks = jnp.asarray(tokens, jnp.int32).reshape(-1)
    T = toks.shape[0]

    h_pad = jnp.zeros((1, Hp), jnp.float32).at[:, :H].set(
        hidden.reshape(1, H).astype(jnp.float32))

    grid_spec = pltpu.PrefetchScalarGridSpec(
        num_scalar_prefetch=1,
        grid=(T, num_tiles),
        in_specs=[
            # Gather ONLY step t's embedding row (data-dependent index via scalar prefetch).
            pl.BlockSpec((1, 1, Ep), lambda t, j, tok: (tok[t], 0, 0)),
            pl.BlockSpec((1, Hp), lambda t, j, tok: (0, 0)),               # initial hidden
            pl.BlockSpec((Ep + Hp, 4 * Hp), lambda t, j, tok: (0, 0)),     # fused GRU weight
            pl.BlockSpec((1, 4 * Hp), lambda t, j, tok: (0, 0)),           # fused GRU bias
            pl.BlockSpec((Hp, TN), lambda t, j, tok: (0, j)),              # vocab tile of W_lin
            pl.BlockSpec((1, TN), lambda t, j, tok: (0, j)),               # vocab tile of b_lin
        ],
        out_specs=(
            pl.BlockSpec((1, 1, TN), lambda t, j, tok: (t, 0, j)),         # per-step logits tile
            pl.BlockSpec((1, Hp), lambda t, j, tok: (0, 0)),               # final hidden
        ),
        scratch_shapes=[pltpu.VMEM((1, Hp), jnp.float32)],
    )

    logits_p, h_new_p = pl.pallas_call(
        decoder_kernel,
        grid_spec=grid_spec,
        out_shape=(jax.ShapeDtypeStruct((T, 1, Vp), jnp.float32),
                   jax.ShapeDtypeStruct((1, Hp), jnp.float32)),
        compiler_params=pltpu.CompilerParams(
            # hidden scratch / resident hidden output are carried across BOTH grid axes
            dimension_semantics=("arbitrary", "arbitrary"),
            vmem_limit_bytes=64 * 1024 * 1024,
        ),
    )(toks, emb_p, h_pad, w_gru, b_gru, w_lin_p, b_lin_p)

    return logits_p[:, 0, :V], h_new_p[:, :H].reshape(1, 1, H)


def decoder_forward(token, hidden, packed, dims):
    """Single step == PyTorch Decoder.forward.  token: (1,) int32; hidden: (1, 1, H) f32.
    Returns (result (1, V), hidden (1, 1, H))."""
    return decoder_decode(token, hidden, packed, dims)


def decoder_forward_ref(token, hidden, params):
    """Pure-JAX f32 reference mirroring the PyTorch forward exactly."""
    emb, w_ih, w_hh, b_ih, b_hh, w_lin, b_lin = params
    H = hidden.shape[-1]
    x = jnp.maximum(emb[token[0]][None, :], 0.0)      # relu(embedded), (1, E)
    h = hidden.reshape(1, H)
    gi = x @ w_ih + b_ih
    gh = h @ w_hh + b_hh
    r = jax.nn.sigmoid(gi[:, :H] + gh[:, :H])
    z = jax.nn.sigmoid(gi[:, H:2 * H] + gh[:, H:2 * H])
    n = jnp.tanh(gi[:, 2 * H:] + r * gh[:, 2 * H:])
    h_new = (1.0 - z) * n + z * h
    return h_new @ w_lin + b_lin, h_new.reshape(1, 1, H)


if __name__ == "__main__":
    hidden_size = 32
    embedding_size = 32
    output_size = 40   # vocab size
    T = 8              # decode steps for the fused multi-step path

    key = jax.random.PRNGKey(0)
    pkey, tkey, hkey = jax.random.split(key, 3)
    params = make_params(pkey, hidden_size, embedding_size, output_size)
    packed, dims = pack_params(params)          # bf16 weights, padded lane-dense layout

    tokens = jax.random.randint(tkey, (T,), 0, output_size, jnp.int32)
    hidden0 = jax.random.normal(hkey, (1, 1, hidden_size), jnp.float32)

    # bf16 weights on the MXU -> tolerances loosened vs the f32 reference (per review note).
    TOL = dict(rtol=5e-2, atol=5e-2)

    # ---- single forward step (exact PyTorch Decoder.forward contract) ----
    result, hidden1 = decoder_forward(tokens[:1], hidden0, packed, dims)
    jax.block_until_ready((result, hidden1))
    ref_result, ref_hidden = decoder_forward_ref(tokens[:1], hidden0, params)
    np.testing.assert_allclose(np.asarray(result), np.asarray(ref_result), **TOL)
    np.testing.assert_allclose(np.asarray(hidden1), np.asarray(ref_hidden), **TOL)
    assert result.shape == (1, output_size)
    assert hidden1.shape == (1, 1, hidden_size)

    # ---- fused T-step decode: one pallas_call, weights DMA'd once, hidden carried in VMEM ----
    logits_T, hidden_T = decoder_decode(tokens, hidden0, packed, dims)
    jax.block_until_ready((logits_T, hidden_T))
    h = hidden0
    refs = []
    for t in range(T):
        r_t, h = decoder_forward_ref(tokens[t:t + 1], h, params)
        refs.append(r_t)
    ref_T = jnp.concatenate(refs, axis=0)
    np.testing.assert_allclose(np.asarray(logits_T), np.asarray(ref_T), **TOL)
    np.testing.assert_allclose(np.asarray(hidden_T), np.asarray(h), **TOL)
    assert logits_T.shape == (T, output_size)

    print("KERNEL_OK")
</pallas_src>

<mosaic_0001>
module attributes {stable_mosaic.version = 11 : i64} {
  func.func @decoder_kernel(%arg0: i32, %arg1: i32, %arg2: memref<1xi32, #tpu.memory_space<smem>>, %arg3: memref<1x1x128xbf16, #tpu.memory_space<vmem>>, %arg4: memref<1x128xf32, #tpu.memory_space<vmem>>, %arg5: memref<256x512xbf16, #tpu.memory_space<vmem>>, %arg6: memref<1x512xf32, #tpu.memory_space<vmem>>, %arg7: memref<128x128xbf16, #tpu.memory_space<vmem>>, %arg8: memref<1x128xf32, #tpu.memory_space<vmem>>, %arg9: memref<1x1x128xf32, #tpu.memory_space<vmem>>, %arg10: memref<1x128xf32, #tpu.memory_space<vmem>>, %arg11: memref<1x128xf32, #tpu.memory_space<vmem>>) attributes {dimension_semantics = [#tpu.dimension_semantics<arbitrary>, #tpu.dimension_semantics<arbitrary>], iteration_bounds = array<i64: 1, 1>, scalar_prefetch = 1 : i64, scratch_operands = 1 : i64, tpu.core_type = #tpu.core_type<tc>, window_params = [{transform_indices = @transform_0, window_bounds = array<i64: 1, 1, 128>}, {pipeline_mode = #tpu.pipeline_mode<synchronous>, transform_indices = @transform_1, window_bounds = array<i64: 1, 128>}, {pipeline_mode = #tpu.pipeline_mode<synchronous>, transform_indices = @transform_2, window_bounds = array<i64: 256, 512>}, {pipeline_mode = #tpu.pipeline_mode<synchronous>, transform_indices = @transform_3, window_bounds = array<i64: 1, 512>}, {transform_indices = @transform_4, window_bounds = array<i64: 128, 128>}, {transform_indices = @transform_5, window_bounds = array<i64: 1, 128>}, {transform_indices = @transform_6, window_bounds = array<i64: 1, 1, 128>}, {pipeline_mode = #tpu.pipeline_mode<synchronous>, transform_indices = @transform_7, window_bounds = array<i64: 1, 128>}]} {
    %c0_i32 = arith.constant 0 : i32
    %0 = arith.cmpi eq, %arg0, %c0_i32 : i32
    %c0_i32_0 = arith.constant 0 : i32
    %1 = arith.cmpi eq, %arg1, %c0_i32_0 : i32
    %2 = arith.andi %0, %1 : i1
    %3 = arith.extui %2 : i1 to i32
    %c0_i32_1 = arith.constant 0 : i32
    %4 = arith.cmpi ne, %3, %c0_i32_1 : i32
    scf.if %4 {
      %c0_12 = arith.constant 0 : index
      %c0_13 = arith.constant 0 : index
      %16 = vector.load %arg4[%c0_12, %c0_13] : memref<1x128xf32, #tpu.memory_space<vmem>>, vector<1x128xf32>
      %c0_14 = arith.constant 0 : index
      %c0_15 = arith.constant 0 : index
      %17 = vector.load %arg11[%c0_14, %c0_15] : memref<1x128xf32, #tpu.memory_space<vmem>>, vector<1x128xf32>
      tpu.vector_store %arg11[%c0_14, %c0_15], %16 {strides = array<i32>} : memref<1x128xf32, #tpu.memory_space<vmem>>, vector<1x128xf32>,
    } else {
    }
    %c0_i32_2 = arith.constant 0 : i32
    %5 = arith.cmpi eq, %arg1, %c0_i32_2 : i32
    %6 = arith.extui %5 : i1 to i32
    %c0_i32_3 = arith.constant 0 : i32
    %7 = arith.cmpi ne, %6, %c0_i32_3 : i32
    scf.if %7 {
      %c0_12 = arith.constant 0 : index
      %c0_13 = arith.constant 0 : index
      %16 = vector.load %arg11[%c0_12, %c0_13] : memref<1x128xf32, #tpu.memory_space<vmem>>, vector<1x128xf32>
      %c0_14 = arith.constant 0 : index
      %c0_15 = arith.constant 0 : index
      %c0_16 = arith.constant 0 : index
      %17 = vector.load %arg3[%c0_14, %c0_15, %c0_16] : memref<1x1x128xbf16, #tpu.memory_space<vmem>>, vector<1x1x128xbf16>
      %18 = vector.shape_cast %17 : vector<1x1x128xbf16> to vector<1x128xbf16>
      %cst_17 = arith.constant 0.000000e+00 : bf16
      %19 = vector.broadcast %cst_17 : bf16 to vector<1x128xbf16>
      %20 = arith.maximumf %18, %19 : vector<1x128xbf16>
      %21 = arith.truncf %16 : vector<1x128xf32> to vector<1x128xbf16>
      %22 = tpu.concatenate %20, %21 in 1 : vector<1x128xbf16>, vector<1x128xbf16> -> vector<1x256xbf16>
      %c0_18 = arith.constant 0 : index
      %c0_19 = arith.constant 0 : index
      %23 = vector.load %arg5[%c0_18, %c0_19] : memref<256x512xbf16, #tpu.memory_space<vmem>>, vector<256x512xbf16>
      %cst_20 = arith.constant dense<0.000000e+00> : vector<1x512xf32>
      %24 = tpu.matmul %22, %23, %cst_20 {dimension_numbers = #tpu.dot_dimension_numbers<[1], [0], [0], [1], [0, 0, 1, 1], [], []>} : vector<1x256xbf16>, vector<256x512xbf16>, vector<1x512xf32> -> vector<1x512xf32>
      %c0_21 = arith.constant 0 : index
      %c0_22 = arith.constant 0 : index
      %25 = vector.load %arg6[%c0_21, %c0_22] : memref<1x512xf32, #tpu.memory_space<vmem>>, vector<1x512xf32>
      %26 = arith.addf %24, %25 : vector<1x512xf32>
      %27 = vector.extract_strided_slice %26 {offsets = [0, 0], sizes = [1, 128], strides = [1, 1]} : vector<1x512xf32> to vector<1x128xf32>
      %28 = arith.negf %27 : vector<1x128xf32>
      %29 = math.exp %28 : vector<1x128xf32>
      %cst_23 = arith.constant 1.000000e+00 : f32
      %30 = vector.broadcast %cst_23 : f32 to vector<1x128xf32>
      %31 = arith.addf %30, %29 : vector<1x128xf32>
      %32 = arith.divf %30, %31 : vector<1x128xf32>
      %33 = vector.extract_strided_slice %26 {offsets = [0, 128], sizes = [1, 128], strides = [1, 1]} : vector<1x512xf32> to vector<1x128xf32>
      %34 = arith.negf %33 : vector<1x128xf32>
      %35 = math.exp %34 : vector<1x128xf32>
      %cst_24 = arith.constant 1.000000e+00 : f32
      %36 = vector.broadcast %cst_24 : f32 to vector<1x128xf32>
      %37 = arith.addf %36, %35 : vector<1x128xf32>
      %38 = arith.divf %36, %37 : vector<1x128xf32>
      %39 = vector.extract_strided_slice %26 {offsets = [0, 256], sizes = [1, 128], strides = [1, 1]} : vector<1x512xf32> to vector<1x128xf32>
      %40 = vector.extract_strided_slice %26 {offsets = [0, 384], sizes = [1, 128], strides = [1, 1]} : vector<1x512xf32> to vector<1x128xf32>
      %41 = arith.mulf %32, %40 : vector<1x128xf32>
      %42 = arith.addf %39, %41 : vector<1x128xf32>
      %43 = math.tanh %42 : vector<1x128xf32>
      %cst_25 = arith.constant 1.000000e+00 : f32
      %44 = vector.broadcast %cst_25 : f32 to vector<1x128xf32>
      %45 = arith.subf %44, %38 : vector<1x128xf32>
      %46 = arith.mulf %45, %43 : vector<1x128xf32>
      %47 = arith.mulf %38, %16 : vector<1x128xf32>
      %48 = arith.addf %46, %47 : vector<1x128xf32>
      %c0_26 = arith.constant 0 : index
      %c0_27 = arith.constant 0 : index
      %49 = vector.load %arg11[%c0_26, %c0_27] : memref<1x128xf32, #tpu.memory_space<vmem>>, vector<1x128xf32>
      tpu.vector_store %arg11[%c0_26, %c0_27], %48 {strides = array<i32>} : memref<1x128xf32, #tpu.memory_space<vmem>>, vector<1x128xf32>,
      %c0_28 = arith.constant 0 : index
      %c0_29 = arith.constant 0 : index
      %50 = vector.load %arg10[%c0_28, %c0_29] : memref<1x128xf32, #tpu.memory_space<vmem>>, vector<1x128xf32>
      tpu.vector_store %arg10[%c0_28, %c0_29], %48 {strides = array<i32>} : memref<1x128xf32, #tpu.memory_space<vmem>>, vector<1x128xf32>,
    } else {
    }
    %c0 = arith.constant 0 : index
    %c0_4 = arith.constant 0 : index
    %8 = vector.load %arg11[%c0, %c0_4] : memref<1x128xf32, #tpu.memory_space<vmem>>, vector<1x128xf32>
    %9 = arith.truncf %8 : vector<1x128xf32> to vector<1x128xbf16>
    %c0_5 = arith.constant 0 : index
    %c0_6 = arith.constant 0 : index
    %10 = vector.load %arg7[%c0_5, %c0_6] : memref<128x128xbf16, #tpu.memory_space<vmem>>, vector<128x128xbf16>
    %cst = arith.constant dense<0.000000e+00> : vector<1x128xf32>
    %11 = tpu.matmul %9, %10, %cst {dimension_numbers = #tpu.dot_dimension_numbers<[1], [0], [0], [1], [0, 0, 1, 1], [], []>} : vector<1x128xbf16>, vector<128x128xbf16>, vector<1x128xf32> -> vector<1x128xf32>
    %c0_7 = arith.constant 0 : index
    %c0_8 = arith.constant 0 : index
    %12 = vector.load %arg8[%c0_7, %c0_8] : memref<1x128xf32, #tpu.memory_space<vmem>>, vector<1x128xf32>
    %13 = arith.addf %11, %12 : vector<1x128xf32>
    %14 = vector.shape_cast %13 : vector<1x128xf32> to vector<1x1x128xf32>
    %c0_9 = arith.constant 0 : index
    %c0_10 = arith.constant 0 : index
    %c0_11 = arith.constant 0 : index
    %15 = vector.load %arg9[%c0_9, %c0_10, %c0_11] : memref<1x1x128xf32, #tpu.memory_space<vmem>>, vector<1x1x128xf32>
    tpu.vector_store %arg9[%c0_9, %c0_10, %c0_11], %14 {strides = array<i32>} : memref<1x1x128xf32, #tpu.memory_space<vmem>>, vector<1x1x128xf32>,
    return
  }
  func.func @transform_0(%arg0: i32, %arg1: i32, %arg2: memref<1xi32, #tpu.memory_space<smem>>) -> (i32, i32, i32) {
    %0 = arith.index_cast %arg0 : i32 to index
    %1 = memref.load %arg2[%0] : memref<1xi32, #tpu.memory_space<smem>>
    %c0_i32 = arith.constant 0 : i32
    %c0_i32_0 = arith.constant 0 : i32
    %c0_i32_1 = arith.constant 0 : i32
    return %1, %c0_i32, %c0_i32_0 : i32, i32, i32
  }
  func.func @transform_1(%arg0: i32, %arg1: i32, %arg2: memref<1xi32, #tpu.memory_space<smem>>) -> (i32, i32) {
    %c0_i32 = arith.constant 0 : i32
    %c0_i32_0 = arith.constant 0 : i32
    %c0_i32_1 = arith.constant 0 : i32
    return %c0_i32, %c0_i32_0 : i32, i32
  }
  func.func @transform_2(%arg0: i32, %arg1: i32, %arg2: memref<1xi32, #tpu.memory_space<smem>>) -> (i32, i32) {
    %c0_i32 = arith.constant 0 : i32
    %c0_i32_0 = arith.constant 0 : i32
    %c0_i32_1 = arith.constant 0 : i32
    return %c0_i32, %c0_i32_0 : i32, i32
  }
  func.func @transform_3(%arg0: i32, %arg1: i32, %arg2: memref<1xi32, #tpu.memory_space<smem>>) -> (i32, i32) {
    %c0_i32 = arith.constant 0 : i32
    %c0_i32_0 = arith.constant 0 : i32
    %c0_i32_1 = arith.constant 0 : i32
    return %c0_i32, %c0_i32_0 : i32, i32
  }
  func.func @transform_4(%arg0: i32, %arg1: i32, %arg2: memref<1xi32, #tpu.memory_space<smem>>) -> (i32, i32) {
    %c0_i32 = arith.constant 0 : i32
    %c0_i32_0 = arith.constant 0 : i32
    return %c0_i32, %arg1 : i32, i32
  }
  func.func @transform_5(%arg0: i32, %arg1: i32, %arg2: memref<1xi32, #tpu.memory_space<smem>>) -> (i32, i32) {
    %c0_i32 = arith.constant 0 : i32
    %c0_i32_0 = arith.constant 0 : i32
    return %c0_i32, %arg1 : i32, i32
  }
  func.func @transform_6(%arg0: i32, %arg1: i32, %arg2: memref<1xi32, #tpu.memory_space<smem>>) -> (i32, i32, i32) {
    %c0_i32 = arith.constant 0 : i32
    %c0_i32_0 = arith.constant 0 : i32
    return %arg0, %c0_i32, %arg1 : i32, i32, i32
  }
  func.func @transform_7(%arg0: i32, %arg1: i32, %arg2: memref<1xi32, #tpu.memory_space<smem>>) -> (i32, i32) {
    %c0_i32 = arith.constant 0 : i32
    %c0_i32_0 = arith.constant 0 : i32
    %c0_i32_1 = arith.constant 0 : i32
    return %c0_i32, %c0_i32_0 : i32, i32
  }
}

</mosaic_0001>

<bundles_post_ra>
// kernel: tpu_custom_call.1
= control target key start
LH: loop header
LB: loop body
LE: loop exit
PB: predicated region body
PF: predicated region fallthrough
CT: control target
= control target key end

     0   :  { %15 = vsyncpa [#allocation6], 0  ;;  %s1367_s0 = inlined_call_operand.<no memory space> [shape: s32[1], index: 0, kind: input, shape index: {}]   ;;  %s1368_s1 = inlined_call_operand.vmem [shape: bf16[40,1,128], index: 1, kind: input, shape index: {}]   ;;  %s1369_s2 = inlined_call_operand.vmem [shape: f32[1,128], index: 2, kind: input, shape index: {}]   ;;  %s1370_s3 = inlined_call_operand.hbm [shape: bf16[256,512], index: 3, kind: input, shape index: {}]   ;;  %s1371_s4 = inlined_call_operand.hbm [shape: f32[1,512], index: 4, kind: input, shape index: {}]   ;;  %s1372_s5 = inlined_call_operand.vmem [shape: bf16[128,128], index: 5, kind: input, shape index: {}]   ;;  %s1373_s6 = inlined_call_operand.vmem [shape: f32[1,128], index: 6, kind: input, shape index: {}]   ;;  %s1374_s7 = inlined_call_operand.hbm [shape: f32[1,1,128], index: 7, kind: output, shape index: {0}]   ;;  %s1375_s8 = inlined_call_operand.hbm [shape: f32[1,128], index: 8, kind: output, shape index: {1}]  }
   0x1   :  { %16 = vsyncpa [#allocation9], 0 }
   0x2   :  { %17 = vsyncpa [#allocation7], 0 }
   0x3   :  { %18 = vsyncpa [#allocation12], 0  ;;  %s32_s29 = sshll.u32 %s1370_s3, 4  ;;  %s1235_s30 = smov [#allocation5]   ;;  %s33_s29 = int_to_ptr.hbm [resolvable:$true] %s32_s29 }
   0x4   :  { %s34_s9 = sshll.u32 %s1235_s30, 4  ;;  %s46_s12 = sshll.u32 %s1371_s4, 4  ;;  %s35_s9 = int_to_ptr.vmem [resolvable:$true] %s34_s9  ;;  %s47_s12 = int_to_ptr.hbm [resolvable:$true] %s46_s12 }
   0x5   :  { %s1236_s13 = smov 256   ;;  %s1237_s14 = smov 16  }
   0x6   :  { %40 = dma.hbm_to_vmem [thread:$0]  %s33_s29, 8192, %s35_s9, [#allocation6], %s1236_s13, %s1236_s13, %s1237_s14  }
   0x7   :  { %s1238_s15 = smov [#allocation8]  }
   0x8   :  { %s48_s16 = sshll.u32 %s1238_s15, 4  ;;  %s49_s16 = int_to_ptr.vmem [resolvable:$true] %s48_s16 }
   0x9   :  { %51 = dma.hbm_to_vmem [thread:$0]  %s47_s12, 64, %s49_s16, [#allocation9]  }
   0xa   :  { %1227 = dma.done.wait [#allocation6], 8192  }
   0xb   :  { %1228 = vsyncadd [#allocation6], 4294959104 }
   0xc   :  { %1229 = dma.done.wait [#allocation9], 64  }
   0xd   :  { %1230 = vsyncadd [#allocation9], 4294967232  ;;  %v867_v0 = vld [vmem:[#allocation5 + $0xe0] sm:$0xf]  ;;  %v1073_v1 = vld [vmem:[#allocation5 + $0xec] sm:$0xf0] }
   0xe   :  { %v1071_v2 = vld [vmem:[#allocation5 + $0xe4] sm:$0xf]  ;;  %v868_v3 = vor.u32 %v1073_v1, %v867_v0  ;;  %v869_v4 = vld [vmem:[#allocation5 + $0xf0] sm:$0xf0]  ;;  %v995_v9 = vld [vmem:[#allocation5 + $0x1e0] sm:$0xf] }
   0xf   :  { %v1103_v5 = vld [vmem:[#allocation5 + $0x1e4] sm:$0xf]  ;;  %v997_v6 = vld [vmem:[#allocation5 + $0x1f0] sm:$0xf0]  ;;  %v872_v7 = vor.u32 %v1071_v2, %v869_v4  ;;  %v1105_v10 = vld [vmem:[#allocation5 + $0x1ec] sm:$0xf0] }
  0x10   :  { %v1000_v8 = vor.u32 %v1103_v5, %v997_v6  ;;  %v851_v11 = vld [vmem:[#allocation5 + $0xc0] sm:$0xf]  ;;  %484 = vmatpush.bf16.msra.mxu0 %v868_v3  ;;  %v996_v12 = vor.u32 %v1105_v10, %v995_v9  ;;  %v1069_v13 = vld [vmem:[#allocation5 + $0xcc] sm:$0xf0]  ;;  %v1067_v14 = vld [vmem:[#allocation5 + $0xc4] sm:$0xf] }
  0x11   :  { %v853_v15 = vld [vmem:[#allocation5 + $0xd0] sm:$0xf0]  ;;  %510 = vmatpush.bf16.msra.mxu2 %v872_v7  ;;  %v852_v16 = vor.u32 %v1069_v13, %v851_v11  ;;  %v1099_v18 = vld [vmem:[#allocation5 + $0x1c4] sm:$0xf]  ;;  %v979_v20 = vld [vmem:[#allocation5 + $0x1c0] sm:$0xf] }
  0x12   :  { %523 = vmatpush.bf16.msra.mxu3 %v1000_v8  ;;  %v856_v17 = vor.u32 %v1067_v14, %v853_v15  ;;  %v981_v19 = vld [vmem:[#allocation5 + $0x1d0] sm:$0xf0]  ;;  %497 = vmatpush.bf16.msra.mxu1 %v996_v12  ;;  %v1101_v22 = vld [vmem:[#allocation5 + $0x1cc] sm:$0xf0]  ;;  %v835_v23 = vld [vmem:[#allocation5 + $0xa0] sm:$0xf] }
  0x13   :  { %v984_v21 = vor.u32 %v1099_v18, %v981_v19  ;;  %v1065_v24 = vld [vmem:[#allocation5 + $0xac] sm:$0xf0]  ;;  %v980_v25 = vor.u32 %v1101_v22, %v979_v20  ;;  %v1063_v26 = vld [vmem:[#allocation5 + $0xa4] sm:$0xf]  ;;  %v837_v27 = vld [vmem:[#allocation5 + $0xb0] sm:$0xf0] }
  0x14   :  { %v1095_v28 = vld [vmem:[#allocation5 + $0x1a4] sm:$0xf]  ;;  %485 = vmatpush.bf16.msra.mxu0 %v852_v16  ;;  %v836_v29 = vor.u32 %v1065_v24, %v835_v23  ;;  %v965_v30 = vld [vmem:[#allocation5 + $0x1b0] sm:$0xf0]  ;;  %v963_v31 = vld [vmem:[#allocation5 + $0x1a0] sm:$0xf]  ;;  %v840_v33 = vor.u32 %v1063_v26, %v837_v27 }
  0x15   :  { %v1097_v32 = vld [vmem:[#allocation5 + $0x1ac] sm:$0xf0]  ;;  %511 = vmatpush.bf16.msra.mxu2 %v856_v17  ;;  %v968_v34 = vor.u32 %v1095_v28, %v965_v30  ;;  %v819_v35 = vld [vmem:[#allocation5 + $0x80] sm:$0xf]  ;;  %v1059_v37 = vld [vmem:[#allocation5 + $0x84] sm:$0xf] }
  0x16   :  { %524 = vmatpush.bf16.msra.mxu3 %v984_v21  ;;  %v1061_v36 = vld [vmem:[#allocation5 + $0x8c] sm:$0xf0]  ;;  %498 = vmatpush.bf16.msra.mxu1 %v980_v25  ;;  %v964_v38 = vor.u32 %v1097_v32, %v963_v31  ;;  %v821_v39 = vld [vmem:[#allocation5 + $0x90] sm:$0xf0]  ;;  %v1091_v40 = vld [vmem:[#allocation5 + $0x184] sm:$0xf] }
  0x17   :  { %v949_v41 = vld [vmem:[#allocation5 + $0x190] sm:$0xf0]  ;;  %v947_v42 = vld [vmem:[#allocation5 + $0x180] sm:$0xf]  ;;  %v1093_v43 = vld [vmem:[#allocation5 + $0x18c] sm:$0xf0]  ;;  %v820_v44 = vor.u32 %v1061_v36, %v819_v35  ;;  %v824_v45 = vor.u32 %v1059_v37, %v821_v39 }
  0x18   :  { %486 = vmatpush.bf16.msra.mxu0 %v836_v29  ;;  %p69_p0 = scmp.lt.s32.totalorder %s1367_s0, 39  ;;  %v952_v46 = vor.u32 %v1091_v40, %v949_v41  ;;  %v803_v47 = vld [vmem:[#allocation5 + $0x60] sm:$0xf]  ;;  %v1057_v48 = vld [vmem:[#allocation5 + $0x6c] sm:$0xf0]  ;;  %v948_v50 = vor.u32 %v1093_v43, %v947_v42  ;;  %s734_s18 = sshll.u32 %s1375_s8, 4  ;;  %s735_s18 = int_to_ptr.hbm [resolvable:$true] %s734_s18 }
  0x19   :  { %512 = vmatpush.bf16.msra.mxu2 %v840_v33  ;;  %v1055_v49 = vld [vmem:[#allocation5 + $0x64] sm:$0xf]  ;;  %v805_v51 = vld [vmem:[#allocation5 + $0x70] sm:$0xf0]  ;;  %v931_v54 = vld [vmem:[#allocation5 + $0x160] sm:$0xf]  ;;  %v804_v56 = vor.u32 %v1057_v48, %v803_v47 }
  0x1a   :  { %525 = vmatpush.bf16.msra.mxu3 %v968_v34  ;;  %499 = vmatpush.bf16.msra.mxu1 %v964_v38  ;;  %v1087_v52 = vld [vmem:[#allocation5 + $0x164] sm:$0xf]  ;;  %v933_v53 = vld [vmem:[#allocation5 + $0x170] sm:$0xf0]  ;;  %v1089_v55 = vld [vmem:[#allocation5 + $0x16c] sm:$0xf0]  ;;  %v808_v57 = vor.u32 %v1055_v49, %v805_v51 }
  0x1b   :  { %s1377_s0 = smov (!%p69_p0, %s1367_s0), 39  ;;  %v936_v58 = vor.u32 %v1087_v52, %v933_v53  ;;  %v787_v59 = vld [vmem:[#allocation5 + $0x40] sm:$0xf]  ;;  %v1053_v60 = vld [vmem:[#allocation5 + $0x4c] sm:$0xf0]  ;;  %v932_v62 = vor.u32 %v1089_v55, %v931_v54  ;;  %s1240_s21 = smov [#allocation10]  }
  0x1c   :  { %487 = vmatpush.bf16.msra.mxu0 %v820_v44  ;;  %v1051_v61 = vld [vmem:[#allocation5 + $0x44] sm:$0xf]  ;;  %v789_v63 = vld [vmem:[#allocation5 + $0x50] sm:$0xf0]  ;;  %v915_v2 = vld [vmem:[#allocation5 + $0x140] sm:$0xf]  ;;  %v788_v4 = vor.u32 %v1053_v60, %v787_v59  ;;  %s71_s23 = scalar_lea.vmem %s1368_s1, %s1377_s0 }
  0x1d   :  { %513 = vmatpush.bf16.msra.mxu2 %v824_v45  ;;  %v1083_v0 = vld [vmem:[#allocation5 + $0x144] sm:$0xf]  ;;  %v917_v1 = vld [vmem:[#allocation5 + $0x150] sm:$0xf0]  ;;  %v1085_v3 = vld [vmem:[#allocation5 + $0x14c] sm:$0xf0]  ;;  %v792_v6 = vor.u32 %v1051_v61, %v789_v63 }
  0x1e   :  { %526 = vmatpush.bf16.msra.mxu3 %v952_v46  ;;  %500 = vmatpush.bf16.msra.mxu1 %v948_v50  ;;  %v771_v5 = vld [vmem:[#allocation5 + $0x20] sm:$0xf]  ;;  %v920_v7 = vor.u32 %v1083_v0, %v917_v1  ;;  %v1049_v8 = vld [vmem:[#allocation5 + $0x2c] sm:$0xf0]  ;;  %v1047_v9 = vld [vmem:[#allocation5 + $0x24] sm:$0xf]  ;;  %v916_v11 = vor.u32 %v1085_v3, %v915_v2 }
  0x1f   :  { %v773_v10 = vld [vmem:[#allocation5 + $0x30] sm:$0xf0]  ;;  %v1079_v12 = vld [vmem:[#allocation5 + $0x124] sm:$0xf]  ;;  %v899_v14 = vld [vmem:[#allocation5 + $0x120] sm:$0xf]  ;;  %v772_v18 = vor.u32 %v1049_v8, %v771_v5 }
  0x20   :  { %488 = vmatpush.bf16.msra.mxu0 %v804_v56  ;;  %v901_v13 = vld [vmem:[#allocation5 + $0x130] sm:$0xf0]  ;;  %v1081_v15 = vld [vmem:[#allocation5 + $0x12c] sm:$0xf0]  ;;  %v755_v16 = vld [vmem:[#allocation5] sm:$0xf]  ;;  %v776_v23 = vor.u32 %v1047_v9, %v773_v10 }
  0x21   :  { %514 = vmatpush.bf16.msra.mxu2 %v808_v57  ;;  %v1045_v17 = vld [vmem:[#allocation5 + $0xc] sm:$0xf0]  ;;  %v1043_v19 = vld [vmem:[#allocation5 + $0x4] sm:$0xf]  ;;  %v757_v20 = vld [vmem:[#allocation5 + $0x10] sm:$0xf0]  ;;  %v904_v24 = vor.u32 %v1079_v12, %v901_v13  ;;  %v900_v29 = vor.u32 %v1081_v15, %v899_v14 }
  0x22   :  { %527 = vmatpush.bf16.msra.mxu3 %v936_v58  ;;  %501 = vmatpush.bf16.msra.mxu1 %v932_v62  ;;  %v1075_v21 = vld [vmem:[#allocation5 + $0x104] sm:$0xf]  ;;  %v85_v22 = vld [vmem:[%s71_s23] sm:$0x1]  ;;  %v885_v25 = vld [vmem:[#allocation5 + $0x110] sm:$0xf0]  ;;  %v756_v35 = vor.u32 %v1045_v17, %v755_v16  ;;  %v760_v39 = vor.u32 %v1043_v19, %v757_v20 }
  0x23   :  { %v883_v26 = vld [vmem:[#allocation5 + $0x100] sm:$0xf]  ;;  %v86_v27 = vunpack.c.l.bf16 %v85_v22  ;;  %v79_v28 = vld [vmem:[%s1369_s2] sm:$0x1]  ;;  %v1077_v30 = vld [vmem:[#allocation5 + $0x10c] sm:$0xf0]  ;;  %v888_v40 = vor.u32 %v1075_v21, %v885_v25 }
  0x24   :  { %489 = vmatpush.bf16.msra.mxu0 %v788_v4  ;;  %v875_v31 = vld [vmem:[#allocation5 + $0xe8] sm:$0xf]  ;;  %80 = vst [vmem:[#allocation2] sm:$0x1] %v79_v28  ;;  %v1074_v32 = vld [vmem:[#allocation5 + $0xf4] sm:$0xf0]  ;;  %v884_v41 = vor.u32 %v1077_v30, %v883_v26 }
  0x25   :  { %515 = vmatpush.bf16.msra.mxu2 %v792_v6  ;;  %v1072_v33 = vld [vmem:[#allocation5 + $0xec] sm:$0xf]  ;;  %v877_v34 = vld [vmem:[#allocation5 + $0xf8] sm:$0xf0]  ;;  %v87_v38 = vmax.f32 %v86_v27, 0.0  ;;  %v876_v42 = vor.u32 %v1074_v32, %v875_v31  ;;  %s721_s22 = sshll.u32 %s1240_s21, 4  ;;  %s722_s22 = int_to_ptr.vmem [resolvable:$true] %s721_s22 }
  0x26   :  { %528 = vmatpush.bf16.msra.mxu3 %v920_v7  ;;  %502 = vmatpush.bf16.msra.mxu1 %v916_v11  ;;  %v1104_v36 = vld [vmem:[#allocation5 + $0x1ec] sm:$0xf]  ;;  %v1005_v37 = vld [vmem:[#allocation5 + $0x1f8] sm:$0xf0]  ;;  %v1003_v43 = vld [vmem:[#allocation5 + $0x1e8] sm:$0xf]  ;;  %v880_v45 = vor.u32 %v1072_v33, %v877_v34 }
  0x27   :  { %v1106_v44 = vld [vmem:[#allocation5 + $0x1f4] sm:$0xf0]  ;;  %v1008_v46 = vor.u32 %v1104_v36, %v1005_v37  ;;  %v859_v47 = vld [vmem:[#allocation5 + $0xc8] sm:$0xf]  ;;  %v1068_v49 = vld [vmem:[#allocation5 + $0xcc] sm:$0xf]  ;;  %v1311_v50 = vpack.c.bf16 %v87_v38, %v87_v38 }
  0x28   :  { %490 = vmatpush.bf16.msra.mxu0 %v772_v18  ;;  %v1070_v48 = vld [vmem:[#allocation5 + $0xd4] sm:$0xf0]  ;;  %v861_v51 = vld [vmem:[#allocation5 + $0xd8] sm:$0xf0]  ;;  %v1100_v52 = vld [vmem:[#allocation5 + $0x1cc] sm:$0xf]  ;;  %v1004_v54 = vor.u32 %v1106_v44, %v1003_v43 }
  0x29   :  { %516 = vmatpush.bf16.msra.mxu2 %v776_v23  ;;  %v989_v53 = vld [vmem:[#allocation5 + $0x1d8] sm:$0xf0]  ;;  %v860_v57 = vor.u32 %v1070_v48, %v859_v47  ;;  %v987_v58 = vld [vmem:[#allocation5 + $0x1c8] sm:$0xf]  ;;  %v1102_v59 = vld [vmem:[#allocation5 + $0x1d4] sm:$0xf0]  ;;  %v864_v60 = vor.u32 %v1068_v49, %v861_v51 }
  0x2a   :  { %529 = vmatpush.bf16.msra.mxu3 %v904_v24  ;;  %503 = vmatpush.bf16.msra.mxu1 %v900_v29  ;;  %v992_v61 = vor.u32 %v1100_v52, %v989_v53  ;;  %v843_v62 = vld [vmem:[#allocation5 + $0xa8] sm:$0xf]  ;;  %v1066_v63 = vld [vmem:[#allocation5 + $0xb4] sm:$0xf0]  ;;  %v1064_v0 = vld [vmem:[#allocation5 + $0xac] sm:$0xf]  ;;  %v988_v4 = vor.u32 %v1102_v59, %v987_v58 }
  0x2b   :  { %v1313_v55 = vld [vmem:[#allocation2] sm:$0x1]  ;;  %v1096_v2 = vld [vmem:[#allocation5 + $0x1ac] sm:$0xf]  ;;  %v844_v5 = vor.u32 %v1066_v63, %v843_v62  ;;  %v971_v6 = vld [vmem:[#allocation5 + $0x1a8] sm:$0xf] }
  0x2c   :  { %491 = vmatpush.bf16.msra.mxu0 %v756_v35  ;;  %v1317_v56 = vpack.c.bf16 %v1313_v55, %v1313_v55  ;;  %v845_v1 = vld [vmem:[#allocation5 + $0xb8] sm:$0xf0]  ;;  %v1098_v7 = vld [vmem:[#allocation5 + $0x1b4] sm:$0xf0]  ;;  %v827_v10 = vld [vmem:[#allocation5 + $0x88] sm:$0xf] }
  0x2d   :  { %517 = vmatpush.bf16.msra.mxu2 %v760_v39  ;;  %v973_v3 = vld [vmem:[#allocation5 + $0x1b8] sm:$0xf0]  ;;  %v848_v8 = vor.u32 %v1064_v0, %v845_v1  ;;  %v1062_v11 = vld [vmem:[#allocation5 + $0x94] sm:$0xf0]  ;;  %v1060_v12 = vld [vmem:[#allocation5 + $0x8c] sm:$0xf]  ;;  %v972_v16 = vor.u32 %v1098_v7, %v971_v6 }
  0x2e   :  { %530 = vmatpush.bf16.msra.mxu3 %v888_v40  ;;  %504 = vmatpush.bf16.msra.mxu1 %v884_v41  ;;  %v976_v9 = vor.u32 %v1096_v2, %v973_v3  ;;  %v829_v13 = vld [vmem:[#allocation5 + $0x98] sm:$0xf0]  ;;  %v1092_v14 = vld [vmem:[#allocation5 + $0x18c] sm:$0xf]  ;;  %v828_v17 = vor.u32 %v1062_v11, %v827_v10  ;;  %v955_v18 = vld [vmem:[#allocation5 + $0x188] sm:$0xf] }
  0x2f   :  { %492 = vmatmul.bf16.vlgmr.msra.gmra.mxu0 %v1311_v50  ;;  %v957_v15 = vld [vmem:[#allocation5 + $0x198] sm:$0xf0]  ;;  %v1094_v19 = vld [vmem:[#allocation5 + $0x194] sm:$0xf0]  ;;  %v832_v20 = vor.u32 %v1060_v12, %v829_v13  ;;  %v811_v22 = vld [vmem:[#allocation5 + $0x68] sm:$0xf] }
  0x30   :  { %536 = vmatpush.bf16.msrb.mxu0 %v876_v42  ;;  %518 = vmatmul.bf16.vlgmr.msra.gmra.mxu2 %v1311_v50  ;;  %v960_v21 = vor.u32 %v1092_v14, %v957_v15  ;;  %v1058_v23 = vld [vmem:[#allocation5 + $0x74] sm:$0xf0]  ;;  %v1056_v24 = vld [vmem:[#allocation5 + $0x6c] sm:$0xf]  ;;  %v813_v25 = vld [vmem:[#allocation5 + $0x78] sm:$0xf0]  ;;  %v956_v28 = vor.u32 %v1094_v19, %v955_v18 }
  0x31   :  { %562 = vmatpush.bf16.msrb.mxu2 %v880_v45  ;;  %531 = vmatmul.bf16.vlgmr.msra.gmra.mxu3 %v1317_v56  ;;  %v1088_v26 = vld [vmem:[#allocation5 + $0x16c] sm:$0xf]  ;;  %v941_v27 = vld [vmem:[#allocation5 + $0x178] sm:$0xf0]  ;;  %v812_v29 = vor.u32 %v1058_v23, %v811_v22  ;;  %v939_v30 = vld [vmem:[#allocation5 + $0x168] sm:$0xf]  ;;  %v816_v32 = vor.u32 %v1056_v24, %v813_v25 }
  0x32   :  { %575 = vmatpush.bf16.msrb.mxu3 %v1008_v46  ;;  %549 = vmatpush.bf16.msrb.mxu1 %v1004_v54  ;;  %v1090_v31 = vld [vmem:[#allocation5 + $0x174] sm:$0xf0]  ;;  %v944_v33 = vor.u32 %v1088_v26, %v941_v27  ;;  %v795_v34 = vld [vmem:[#allocation5 + $0x48] sm:$0xf]  ;;  %v1052_v36 = vld [vmem:[#allocation5 + $0x4c] sm:$0xf] }
  0x33   :  { %505 = vmatmul.bf16.vlgmr.msra.gmra.mxu1 %v1317_v56  ;;  %v1054_v35 = vld [vmem:[#allocation5 + $0x54] sm:$0xf0]  ;;  %v797_v37 = vld [vmem:[#allocation5 + $0x58] sm:$0xf0]  ;;  %v1084_v38 = vld [vmem:[#allocation5 + $0x14c] sm:$0xf]  ;;  %v940_v40 = vor.u32 %v1090_v31, %v939_v30 }
  0x34   :  { %537 = vmatpush.bf16.msrb.mxu0 %v860_v57  ;;  %v925_v39 = vld [vmem:[#allocation5 + $0x158] sm:$0xf0]  ;;  %v796_v41 = vor.u32 %v1054_v35, %v795_v34  ;;  %v923_v42 = vld [vmem:[#allocation5 + $0x148] sm:$0xf]  ;;  %v1086_v43 = vld [vmem:[#allocation5 + $0x154] sm:$0xf0]  ;;  %v800_v44 = vor.u32 %v1052_v36, %v797_v37 }
  0x35   :  { %563 = vmatpush.bf16.msrb.mxu2 %v864_v60  ;;  %v928_v45 = vor.u32 %v1084_v38, %v925_v39  ;;  %v779_v46 = vld [vmem:[#allocation5 + $0x28] sm:$0xf]  ;;  %v1050_v47 = vld [vmem:[#allocation5 + $0x34] sm:$0xf0]  ;;  %v1048_v48 = vld [vmem:[#allocation5 + $0x2c] sm:$0xf]  ;;  %v924_v53 = vor.u32 %v1086_v43, %v923_v42 }
  0x36   :  { %576 = vmatpush.bf16.msrb.mxu3 %v992_v61  ;;  %550 = vmatpush.bf16.msrb.mxu1 %v988_v4  ;;  %v781_v49 = vld [vmem:[#allocation5 + $0x38] sm:$0xf0]  ;;  %v1080_v51 = vld [vmem:[#allocation5 + $0x12c] sm:$0xf]  ;;  %v780_v54 = vor.u32 %v1050_v47, %v779_v46  ;;  %v907_v57 = vld [vmem:[#allocation5 + $0x128] sm:$0xf] }
  0x37   :  { %v909_v52 = vld [vmem:[#allocation5 + $0x138] sm:$0xf0]  ;;  %v1082_v58 = vld [vmem:[#allocation5 + $0x134] sm:$0xf0]  ;;  %v784_v59 = vor.u32 %v1048_v48, %v781_v49  ;;  %v763_v61 = vld [vmem:[#allocation5 + $0x8] sm:$0xf] }
  0x38   :  { %538 = vmatpush.bf16.msrb.mxu0 %v844_v5  ;;  %v912_v60 = vor.u32 %v1080_v51, %v909_v52  ;;  %v1046_v62 = vld [vmem:[#allocation5 + $0x14] sm:$0xf0]  ;;  %v1044_v63 = vld [vmem:[#allocation5 + $0xc] sm:$0xf]  ;;  %v765_v0 = vld [vmem:[#allocation5 + $0x18] sm:$0xf0]  ;;  %v908_v3 = vor.u32 %v1082_v58, %v907_v57 }
  0x39   :  { %564 = vmatpush.bf16.msrb.mxu2 %v848_v8  ;;  %v1076_v1 = vld [vmem:[#allocation5 + $0x10c] sm:$0xf]  ;;  %v893_v2 = vld [vmem:[#allocation5 + $0x118] sm:$0xf0]  ;;  %v764_v4 = vor.u32 %v1046_v62, %v763_v61  ;;  %v891_v5 = vld [vmem:[#allocation5 + $0x108] sm:$0xf]  ;;  %v768_v7 = vor.u32 %v1044_v63, %v765_v0 }
  0x3a   :  { %577 = vmatpush.bf16.msrb.mxu3 %v976_v9  ;;  %551 = vmatpush.bf16.msrb.mxu1 %v972_v16  ;;  %v1078_v6 = vld [vmem:[#allocation5 + $0x114] sm:$0xf0]  ;;  %v896_v8 = vor.u32 %v1076_v1, %v893_v2  ;;  %v1327_v10 = vld [vmem:[#allocation8] sm:$0xf]  ;;  %v1112_v24 = vld [vmem:[%s1372_s5 + $0x28] sm:$0xff]  ;;  %s723_s1 = sshll.u32 %s1374_s7, 4  ;;  %s724_s1 = int_to_ptr.hbm [resolvable:$true] %s723_s1 }
  0x3b   :  { %v892_v9 = vor.u32 %v1078_v6, %v891_v5  ;;  %v476_v11 = vperm.slane %v1327_v10, 0  ;;  %v1114_v14 = vld [vmem:[%s1372_s5 + $0x38] sm:$0xff]  ;;  %v1109_v35 = vld [vmem:[%s1372_s5 + $0x10] sm:$0xff]  ;;  %v1108_v38 = vld [vmem:[%s1372_s5 + $0x8] sm:$0xff]  ;;  %v479_v47 = vperm.slane %v1327_v10, 3 }
  0x3c   :  { %539 = vmatpush.bf16.msrb.mxu0 %v828_v17  ;;  %v477_v17 = vperm.slane %v1327_v10, 1  ;;  %v1110_v31 = vld [vmem:[%s1372_s5 + $0x18] sm:$0xff] }
  0x3d   :  { %565 = vmatpush.bf16.msrb.mxu2 %v832_v20 }
  0x3e   :  { %578 = vmatpush.bf16.msrb.mxu3 %v960_v21  ;;  %552 = vmatpush.bf16.msrb.mxu1 %v956_v28 }
  0x40   :  { %540 = vmatpush.bf16.msrb.mxu0 %v812_v29  ;;  %v1111_v29 = vld [vmem:[%s1372_s5 + $0x20] sm:$0xff] }
  0x41   :  { %566 = vmatpush.bf16.msrb.mxu2 %v816_v32 }
  0x42   :  { %579 = vmatpush.bf16.msrb.mxu3 %v944_v33  ;;  %553 = vmatpush.bf16.msrb.mxu1 %v940_v40  ;;  %v1107_v40 = vld [vmem:[%s1372_s5] sm:$0xff] }
  0x44   :  { %541 = vmatpush.bf16.msrb.mxu0 %v796_v41 }
  0x45   :  { %567 = vmatpush.bf16.msrb.mxu2 %v800_v44  ;;  %v478_v44 = vperm.slane %v1327_v10, 2 }
  0x46   :  { %580 = vmatpush.bf16.msrb.mxu3 %v928_v45  ;;  %554 = vmatpush.bf16.msrb.mxu1 %v924_v53 }
  0x48   :  { %542 = vmatpush.bf16.msrb.mxu0 %v780_v54 }
  0x49   :  { %568 = vmatpush.bf16.msrb.mxu2 %v784_v59 }
  0x4a   :  { %581 = vmatpush.bf16.msrb.mxu3 %v912_v60  ;;  %555 = vmatpush.bf16.msrb.mxu1 %v908_v3 }
  0x4c   :  { %543 = vmatpush.bf16.msrb.mxu0 %v764_v4 }
  0x4d   :  { %569 = vmatpush.bf16.msrb.mxu2 %v768_v7 }
  0x4e   :  { %582 = vmatpush.bf16.msrb.mxu3 %v896_v8  ;;  %556 = vmatpush.bf16.msrb.mxu1 %v892_v9 }
  0x4f   :  { %544 = vmatmul.bf16.vlgmr.msrb.gmra.mxu0 %v1311_v50 }
  0x50   :  { %570 = vmatmul.bf16.vlgmr.msrb.gmra.mxu2 %v1311_v50  ;;  %702 = vmatpush.bf16.msra.mxu0 %v1114_v14 }
  0x51   :  { %583 = vmatmul.bf16.vlgmr.msrb.gmra.mxu3 %v1317_v56  ;;  %557 = vmatmul.bf16.vlgmr.msrb.gmra.mxu1 %v1317_v56  ;;  %v1113_v56 = vld [vmem:[%s1372_s5 + $0x30] sm:$0xff]  ;;  %s1239_s5 = smov [#allocation11]  }
  0x52   :  { %s732_s3 = sshll.u32 %s1239_s5, 4  ;;  %s733_s3 = int_to_ptr.vmem [resolvable:$true] %s732_s3 }
  0x54   :  { %703 = vmatpush.bf16.msra.mxu0 %v1113_v56 }
  0x58   :  { %704 = vmatpush.bf16.msra.mxu0 %v1112_v24 }
  0x5c   :  { %705 = vmatpush.bf16.msra.mxu0 %v1111_v29 }
  0x60   :  { %706 = vmatpush.bf16.msra.mxu0 %v1110_v31 }
  0x64   :  { %707 = vmatpush.bf16.msra.mxu0 %v1109_v35 }
  0x68   :  { %708 = vmatpush.bf16.msra.mxu0 %v1108_v38 }
  0x6c   :  { %709 = vmatpush.bf16.msra.mxu0 %v1107_v40 }
  0xac   :  { %v493_v12 = vpop.f32.mrf.mxu0 }
  0xad   :  { %v494_v13 = vadd.f32 %v493_v12, %v476_v11 }
  0xb0   :  { %v506_v15 = vpop.f32.mrf.mxu1 }
  0xb1   :  { %v507_v16 = vadd.f32 %v506_v15, %v494_v13 }
  0xb3   :  { %v1009_v50 = vmul.f32 -1.442695, %v507_v16  ;;  %v519_v18 = vpop.f32.mrf.mxu2 }
  0xb4   :  { %v520_v19 = vadd.f32 %v519_v18, %v477_v17  ;;  %v532_v20 = vpop.f32.mrf.mxu3  ;;  %v495_v21 = vpop.f32.mrf.mxu0  ;;  %v653_v18 = vld [vmem:[%s1373_s6] sm:$0x1] }
  0xb5   :  { %1121 = vpow2.f32 %v1009_v50 }
  0xb6   :  { %v533_v22 = vadd.f32 %v532_v20, %v520_v19 }
  0xb8   :  { %v508_v23 = vpop.f32.mrf.mxu1  ;;  %v1010_v25 = vmul.f32 -1.442695, %v533_v22 }
  0xba   :  { %1123 = vpow2.f32 %v1010_v25 }
  0xbb   :  { %v1122_v26 = vpop.eup %1121  ;;  %v521_v28 = vpop.f32.mrf.mxu2 }
  0xbc   :  { %v591_v27 = vadd.f32 1.0, %v1122_v26  ;;  %v534_v30 = vpop.f32.mrf.mxu3 }
  0xbe   :  { %1125 = vrcp.f32 %v591_v27  ;;  %vm597_vm0 = vweird.f32 %v591_v27  ;;  %v603_v49 = vand.u32 2147483648, %v591_v27  ;;  %v601_v52 = vand.u32 2147483647, %v591_v27 }
  0xc0   :  { %v1124_v32 = vpop.eup %1123  ;;  %v604_v61 = vor.u32 1.1754944e-38, %v603_v49  ;;  %vm602_vm3 = vcmp.eq.f32.partialorder %v601_v52, 8.507059e+37 }
  0xc1   :  { %v610_v33 = vadd.f32 1.0, %v1124_v32 }
  0xc3   :  { %1127 = vrcp.f32 %v610_v33  ;;  %vm616_vm4 = vweird.f32 %v610_v33  ;;  %v622_v3 = vand.u32 2147483648, %v610_v33  ;;  %v620_v5 = vand.u32 2147483647, %v610_v33 }
  0xc4   :  { %v1126_v34 = vpop.eup %1125 }
  0xc5   :  { %v593_v36 = vmul.f32 %v1126_v34, %v591_v27  ;;  %vm598_vm1 = vweird.f32 %v1126_v34  ;;  %v623_v10 = vor.u32 1.1754944e-38, %v622_v3  ;;  %vm621_vm7 = vcmp.eq.f32.partialorder %v620_v5, 8.507059e+37 }
  0xc6   :  { %vm599_vm2 = vmor %vm597_vm0, %vm598_vm1 }
  0xc7   :  { %v594_v37 = vsub.f32 1.0, %v593_v36 }
  0xc9   :  { %v1128_v39 = vpop.eup %1127  ;;  %v595_v43 = vmul.f32 %v1126_v34, %v594_v37 }
  0xca   :  { %v612_v41 = vmul.f32 %v1128_v39, %v610_v33  ;;  %vm617_vm5 = vweird.f32 %v1128_v39 }
  0xcb   :  { %v596_v48 = vadd.f32 %v1126_v34, %v595_v43  ;;  %vm618_vm6 = vmor %vm616_vm4, %vm617_vm5 }
  0xcc   :  { %v545_v42 = vpop.f32.mrf.mxu0  ;;  %v613_v45 = vsub.f32 1.0, %v612_v41 }
  0xcd   :  { %v546_v51 = vadd.f32 %v545_v42, %v478_v44  ;;  %v600_v59 = vsel %vm599_vm2, %v1126_v34, %v596_v48 }
  0xce   :  { %v558_v46 = vpop.f32.mrf.mxu1  ;;  %v614_v53 = vmul.f32 %v1128_v39, %v613_v45  ;;  %v605_v1 = vsel %vm602_vm3, %v604_v61, %v600_v59 }
  0xcf   :  { %v559_v62 = vadd.f32 %v558_v46, %v546_v51 }
  0xd0   :  { %v615_v0 = vadd.f32 %v1128_v39, %v614_v53 }
  0xd2   :  { %v619_v7 = vsel %vm618_vm6, %v1128_v39, %v615_v0 }
  0xd3   :  { %v571_v54 = vpop.f32.mrf.mxu2  ;;  %v624_v11 = vsel %vm621_vm7, %v623_v10, %v619_v7 }
  0xd4   :  { %v584_v57 = vpop.f32.mrf.mxu3  ;;  %v572_v58 = vadd.f32 %v571_v54, %v479_v47  ;;  %v547_v60 = vpop.f32.mrf.mxu0  ;;  %v629_v12 = vsub.f32 1.0, %v624_v11  ;;  %v631_v15 = vmul.f32 %v624_v11, %v1313_v55 }
  0xd6   :  { %v585_v63 = vadd.f32 %v584_v57, %v572_v58  ;;  %v560_v2 = vpop.f32.mrf.mxu1 }
  0xd8   :  { %v626_v4 = vmul.f32 %v605_v1, %v585_v63 }
  0xda   :  { %v627_v6 = vadd.f32 %v626_v4, %v559_v62 }
  0xdb   :  { %v573_v8 = vpop.f32.mrf.mxu2 }
  0xdc   :  { %v586_v9 = vpop.f32.mrf.mxu3  ;;  %1129 = vtanh.f32 %v627_v6 }
  0xe2   :  { %v1130_v13 = vpop.eup %1129 }
  0xe3   :  { %v630_v14 = vmul.f32 %v1130_v13, %v629_v12 }
  0xe5   :  { %v632_v16 = vadd.f32 %v631_v15, %v630_v14 }
  0xe7   :  { %633 = vst [vmem:[#allocation2] sm:$0x1] %v632_v16 }
  0xe8   :  { %634 = vst [vmem:[#allocation11] sm:$0x1] %v632_v16 }
  0xe9   :  { %737 = dma.vmem_to_hbm [thread:$0]  %s733_s3, 16, %s735_s18, [#allocation12]  }
  0xee   :  { %v635_v17 = vld [vmem:[#allocation2] sm:$0x1] }
  0xef   :  { %v636_v50 = vpack.c.bf16 %v635_v17, %v635_v17 }
  0xf1   :  { %710 = vmatmul.bf16.vlgmr.msra.gmra.mxu0 %v636_v50 }
 0x16e   :  { %v711_v55 = vpop.f32.mrf.mxu0 }
 0x16f   :  { %v712_v56 = vadd.f32 %v711_v55, %v653_v18 }
 0x171   :  { %715 = vst [vmem:[#allocation10] sm:$0x1] %v712_v56 }
 0x172   :  { %726 = dma.vmem_to_hbm [thread:$0]  %s722_s22, 16, %s724_s1, [#allocation7]  }
 0x176   :  { %v713_v19 = vpop.f32.mrf.mxu0 }
 0x177   :  { %1231 = dma.done.wait [#allocation7], 16  }
 0x178   :  { %1232 = vsyncadd [#allocation7], 4294967280 }
 0x179   :  { %1233 = dma.done.wait [#allocation12], 16  }
 0x17a   :  { %1234 = vsyncadd [#allocation12], 4294967280 }
 0x17b   :  { %746 = vsyncpa [#allocation6], 1 }
 0x17c   :  { %747 = vsyncpa [#allocation9], 1 }
 0x17d   :  { %748 = vsyncpa [#allocation7], 1 }
 0x17e   :  { %749 = vsyncpa [#allocation12], 1 }

</bundles_post_ra>
